<compile_context>
chip_gen: v5e
topology: v5e:2x2
jax: 0.10.0
libtpu: 0.0.40
codegen_flags: <defaults>
</compile_context>

<pallas_src>
import math

import jax
import jax.numpy as jnp
from jax.experimental import pallas as pl
from jax.experimental.pallas import tpu as pltpu


def _round_up(n, m):
    return ((n + m - 1) // m) * m


def _pad_to(a, shape):
    pads = [(0, t - s) for s, t in zip(a.shape, shape)]
    return jnp.pad(a, pads)


# --------------------------------------------------------------------------- #
# Kernel
# --------------------------------------------------------------------------- #
def _make_kernel(widths, head_p):
    """Build the fused-MLP kernel.

    widths: padded output width of each of the 4 trunk layers (Python ints).
    head_p: lane-dense width of the fused head output slab (128-multiple).
    """

    def kernel(x_ref, w1_ref, w2_ref, w3_ref, w4_ref, wh_ref, b_ref, out_ref):
        # Entire (tiny) problem lives in one VMEM-resident block; grid is empty.
        def layer(h, w_ref, row, width):
            acc = jnp.dot(h, w_ref[...], preferred_element_type=jnp.float32)
            acc = acc + b_ref[row:row + 1, 0:width]      # static slice of packed biases
            return jnp.maximum(acc, 0.0).astype(jnp.bfloat16)

        # Trunk: four Linear + ReLU layers (bf16 MXU operands, f32 accumulate).
        h = layer(x_ref[...], w1_ref, 0, widths[0])
        h = layer(h, w2_ref, 1, widths[1])
        h = layer(h, w3_ref, 2, widths[2])
        h = layer(h, w4_ref, 3, widths[3])

        # Fused heads: single lane-dense matmul + unmasked store.  Lanes
        # [0, n_stpt) hold the setpoint head, lanes [n_stpt, n_stpt+n_blind)
        # the blind head, remaining lanes are zero padding.
        out_ref[...] = (jnp.dot(h, wh_ref[...], preferred_element_type=jnp.float32)
                        + b_ref[4:5, 0:head_p]).astype(out_ref.dtype)

    return kernel


# --------------------------------------------------------------------------- #
# Parameter packing + wrapper
# --------------------------------------------------------------------------- #
def prepare_params(params):
    """Pack the six Linear layers for the kernel.

    params: [(W, b)] * 6 in order l1, l2, l3, l4, stpt_head, blind_head;
            W has shape (in, out), b has shape (1, out) (or (out,)), f32.

    Returns (weights, packed_bias, meta).
      * weights: 5 bf16 arrays; K/feature dims padded only to multiples of 16
        (bf16 sublane pack); the fused-head lane dim is padded to 128.
      * packed_bias: single (5, bias_cols) f32 buffer, one row per layer.
    """
    (w1, b1), (w2, b2), (w3, b3), (w4, b4), (ws, bs), (wb, bb) = params

    d_in = w1.shape[0]
    dims = [d_in, w1.shape[1], w2.shape[1], w3.shape[1], w4.shape[1]]
    # bf16 sublane pack is 16; do NOT pad feature/K dims to 128.
    pdims = [_round_up(d, 16) for d in dims]

    n_stpt, n_blind = ws.shape[1], wb.shape[1]
    head_p = max(128, _round_up(n_stpt + n_blind, 128))   # lane-dense output slab

    trunk_w, trunk_b = [], []
    for (w, b), kin_p, kout_p in zip([(w1, b1), (w2, b2), (w3, b3), (w4, b4)],
                                     pdims[:-1], pdims[1:]):
        wp = _pad_to(jnp.asarray(w, jnp.float32), (kin_p, kout_p)).astype(jnp.bfloat16)
        trunk_w.append(wp)
        trunk_b.append(jnp.reshape(jnp.asarray(b, jnp.float32), (-1,)))

    # Fuse the two heads into one lane-dense weight / bias pair.
    wh = jnp.zeros((pdims[-1], head_p), jnp.float32)
    wh = wh.at[:ws.shape[0], :n_stpt].set(jnp.asarray(ws, jnp.float32))
    wh = wh.at[:wb.shape[0], n_stpt:n_stpt + n_blind].set(jnp.asarray(wb, jnp.float32))
    bh = jnp.zeros((head_p,), jnp.float32)
    bh = bh.at[:n_stpt].set(jnp.reshape(jnp.asarray(bs, jnp.float32), (-1,)))
    bh = bh.at[n_stpt:n_stpt + n_blind].set(jnp.reshape(jnp.asarray(bb, jnp.float32), (-1,)))

    # Pack all biases into a single f32 buffer (one DMA instead of five).
    widths = pdims[1:] + [head_p]                    # per-layer padded output width
    bias_cols = _round_up(max(widths), 128)
    b_all = jnp.zeros((len(widths), bias_cols), jnp.float32)
    for i, bvec in enumerate(trunk_b + [bh]):
        b_all = b_all.at[i, :bvec.shape[0]].set(bvec)

    weights = trunk_w + [wh.astype(jnp.bfloat16)]
    meta = dict(d_in=d_in, pdims=pdims, widths=widths, head_p=head_p,
                n_stpt=n_stpt, n_blind=n_blind)
    return weights, b_all, meta


def dqn_blinds_forward(x, weights, b_all, meta):
    """Fused forward pass; returns (stpt, blnd) in f32 with shapes (B, n_*)."""
    B = x.shape[0]
    B_p = max(16, _round_up(B, 16))          # bf16 packs 16 rows per sublane group
    d_in = meta["d_in"]
    pdims = meta["pdims"]
    widths = meta["widths"]
    head_p = meta["head_p"]
    n_stpt, n_blind = meta["n_stpt"], meta["n_blind"]

    # Single fused cast + pad (no zeros + scatter, no separate HBM round trip).
    x_p = jnp.pad(x.astype(jnp.bfloat16),
                  ((0, B_p - B), (0, pdims[0] - d_in)))

    layer_pairs = list(zip(pdims, widths))   # (K, N) for the 4 trunk layers + head
    flops = 2 * B_p * sum(k * n for k, n in layer_pairs)
    bytes_accessed = (x_p.size * x_p.dtype.itemsize
                      + sum(int(a.size) * a.dtype.itemsize for a in weights)
                      + int(b_all.size) * b_all.dtype.itemsize
                      + B_p * head_p * 4)

    vmem = pl.BlockSpec(memory_space=pltpu.VMEM)
    out = pl.pallas_call(
        _make_kernel(widths, head_p),
        out_shape=jax.ShapeDtypeStruct((B_p, head_p), jnp.float32),
        in_specs=[vmem] * (1 + len(weights) + 1),
        out_specs=vmem,
        cost_estimate=pl.CostEstimate(flops=int(flops), transcendentals=0,
                                      bytes_accessed=int(bytes_accessed)),
    )(x_p, *weights, b_all)

    stpt = out[:B, :n_stpt]
    blnd = out[:B, n_stpt:n_stpt + n_blind]
    return stpt, blnd


# --------------------------------------------------------------------------- #
# Init + references
# --------------------------------------------------------------------------- #
def init_linear(key, fan_in, fan_out):
    # Deterministic init mimicking torch.nn.Linear default (uniform +/- 1/sqrt(fan_in)).
    kw, kb = jax.random.split(key)
    bound = 1.0 / math.sqrt(fan_in)
    w = jax.random.uniform(kw, (fan_in, fan_out), jnp.float32, -bound, bound)
    b = jax.random.uniform(kb, (1, fan_out), jnp.float32, -bound, bound)
    return w, b


def reference_forward_f32(x, params):
    # Exact f32 module semantics.
    h = x.astype(jnp.float32)
    for w, b in params[:4]:
        h = jnp.maximum(h @ w + b, 0.0)
    stpt = h @ params[4][0] + params[4][1]
    blnd = h @ params[5][0] + params[5][1]
    return stpt, blnd


def reference_forward_bf16(x, params):
    # Matches the kernel's mixed precision (bf16 operands, f32 accumulate/bias).
    h = x.astype(jnp.bfloat16)
    for w, b in params[:4]:
        acc = jnp.dot(h, w.astype(jnp.bfloat16),
                      preferred_element_type=jnp.float32) + b
        h = jnp.maximum(acc, 0.0).astype(jnp.bfloat16)
    stpt = jnp.dot(h, params[4][0].astype(jnp.bfloat16),
                   preferred_element_type=jnp.float32) + params[4][1]
    blnd = jnp.dot(h, params[5][0].astype(jnp.bfloat16),
                   preferred_element_type=jnp.float32) + params[5][1]
    return stpt, blnd


if __name__ == "__main__":
    # Small shapes consistent with the module's __init__.
    batch = 2
    input_dims = (16,)
    n_stpt_actions = 5
    n_blind_actions = 3

    key = jax.random.PRNGKey(0)
    keys = jax.random.split(key, 7)

    layer_sizes = [(input_dims[0], 50), (50, 100), (100, 200), (200, 400),
                   (400, n_stpt_actions), (400, n_blind_actions)]
    params = [init_linear(k, fi, fo) for k, (fi, fo) in zip(keys[:6], layer_sizes)]

    x = jax.random.normal(keys[6], (batch, input_dims[0]), jnp.float32)

    weights, b_all, meta = prepare_params(params)

    # jit the whole wrapper so the tiny cast/pad and head slices fuse around
    # the custom call (one dispatch per forward).
    @jax.jit
    def fwd(xx, ws, ball):
        return dqn_blinds_forward(xx, list(ws), ball, meta)

    stpt, blnd = fwd(x, tuple(weights), b_all)
    jax.block_until_ready((stpt, blnd))

    # Tight check vs. a precision-matched (bf16-operand) reference.
    stpt_bf, blnd_bf = reference_forward_bf16(x, params)
    assert jnp.allclose(stpt, stpt_bf, atol=1e-3, rtol=1e-3)
    assert jnp.allclose(blnd, blnd_bf, atol=1e-3, rtol=1e-3)

    # Loose check vs. the original f32 module semantics (bf16 weight quantization only).
    stpt_f32, blnd_f32 = reference_forward_f32(x, params)
    assert jnp.allclose(stpt, stpt_f32, atol=5e-2, rtol=5e-2)
    assert jnp.allclose(blnd, blnd_f32, atol=5e-2, rtol=5e-2)

    assert stpt.shape == (batch, n_stpt_actions)
    assert blnd.shape == (batch, n_blind_actions)

    print("KERNEL_OK")
</pallas_src>

<mosaic_0001>
module attributes {stable_mosaic.version = 11 : i64} {
  func.func @kernel(%arg0: memref<16x16xbf16, #tpu.memory_space<vmem>>, %arg1: memref<16x64xbf16, #tpu.memory_space<vmem>>, %arg2: memref<64x112xbf16, #tpu.memory_space<vmem>>, %arg3: memref<112x208xbf16, #tpu.memory_space<vmem>>, %arg4: memref<208x400xbf16, #tpu.memory_space<vmem>>, %arg5: memref<400x128xbf16, #tpu.memory_space<vmem>>, %arg6: memref<5x512xf32, #tpu.memory_space<vmem>>, %arg7: memref<16x128xf32, #tpu.memory_space<vmem>>) attributes {dimension_semantics = [], scalar_prefetch = 0 : i64, scratch_operands = 0 : i64, tpu.core_type = #tpu.core_type<tc>} {
    %c0 = arith.constant 0 : index
    %c0_0 = arith.constant 0 : index
    %0 = vector.load %arg0[%c0, %c0_0] : memref<16x16xbf16, #tpu.memory_space<vmem>>, vector<16x16xbf16>
    %c0_1 = arith.constant 0 : index
    %c0_2 = arith.constant 0 : index
    %1 = vector.load %arg1[%c0_1, %c0_2] : memref<16x64xbf16, #tpu.memory_space<vmem>>, vector<16x64xbf16>
    %cst = arith.constant dense<0.000000e+00> : vector<16x64xf32>
    %2 = tpu.matmul %0, %1, %cst {dimension_numbers = #tpu.dot_dimension_numbers<[1], [0], [0], [1], [0, 0, 1, 1], [], []>} : vector<16x16xbf16>, vector<16x64xbf16>, vector<16x64xf32> -> vector<16x64xf32>
    %c0_3 = arith.constant 0 : index
    %c0_4 = arith.constant 0 : index
    %3 = vector.load %arg6[%c0_3, %c0_4] : memref<5x512xf32, #tpu.memory_space<vmem>>, vector<1x64xf32>
    %4 = vector.broadcast %3 : vector<1x64xf32> to vector<16x64xf32>
    %5 = arith.addf %2, %4 : vector<16x64xf32>
    %cst_5 = arith.constant 0.000000e+00 : f32
    %6 = vector.broadcast %cst_5 : f32 to vector<16x64xf32>
    %7 = arith.maximumf %5, %6 : vector<16x64xf32>
    %8 = arith.truncf %7 : vector<16x64xf32> to vector<16x64xbf16>
    %c0_6 = arith.constant 0 : index
    %c0_7 = arith.constant 0 : index
    %9 = vector.load %arg2[%c0_6, %c0_7] : memref<64x112xbf16, #tpu.memory_space<vmem>>, vector<64x112xbf16>
    %cst_8 = arith.constant dense<0.000000e+00> : vector<16x112xf32>
    %10 = tpu.matmul %8, %9, %cst_8 {dimension_numbers = #tpu.dot_dimension_numbers<[1], [0], [0], [1], [0, 0, 1, 1], [], []>} : vector<16x64xbf16>, vector<64x112xbf16>, vector<16x112xf32> -> vector<16x112xf32>
    %c1 = arith.constant 1 : index
    %c0_9 = arith.constant 0 : index
    %11 = vector.load %arg6[%c1, %c0_9] : memref<5x512xf32, #tpu.memory_space<vmem>>, vector<1x112xf32>
    %12 = vector.broadcast %11 : vector<1x112xf32> to vector<16x112xf32>
    %13 = arith.addf %10, %12 : vector<16x112xf32>
    %cst_10 = arith.constant 0.000000e+00 : f32
    %14 = vector.broadcast %cst_10 : f32 to vector<16x112xf32>
    %15 = arith.maximumf %13, %14 : vector<16x112xf32>
    %16 = arith.truncf %15 : vector<16x112xf32> to vector<16x112xbf16>
    %c0_11 = arith.constant 0 : index
    %c0_12 = arith.constant 0 : index
    %17 = vector.load %arg3[%c0_11, %c0_12] : memref<112x208xbf16, #tpu.memory_space<vmem>>, vector<112x208xbf16>
    %cst_13 = arith.constant dense<0.000000e+00> : vector<16x208xf32>
    %18 = tpu.matmul %16, %17, %cst_13 {dimension_numbers = #tpu.dot_dimension_numbers<[1], [0], [0], [1], [0, 0, 1, 1], [], []>} : vector<16x112xbf16>, vector<112x208xbf16>, vector<16x208xf32> -> vector<16x208xf32>
    %c2 = arith.constant 2 : index
    %c0_14 = arith.constant 0 : index
    %19 = vector.load %arg6[%c2, %c0_14] : memref<5x512xf32, #tpu.memory_space<vmem>>, vector<1x208xf32>
    %20 = vector.broadcast %19 : vector<1x208xf32> to vector<16x208xf32>
    %21 = arith.addf %18, %20 : vector<16x208xf32>
    %cst_15 = arith.constant 0.000000e+00 : f32
    %22 = vector.broadcast %cst_15 : f32 to vector<16x208xf32>
    %23 = arith.maximumf %21, %22 : vector<16x208xf32>
    %24 = arith.truncf %23 : vector<16x208xf32> to vector<16x208xbf16>
    %c0_16 = arith.constant 0 : index
    %c0_17 = arith.constant 0 : index
    %25 = vector.load %arg4[%c0_16, %c0_17] : memref<208x400xbf16, #tpu.memory_space<vmem>>, vector<208x400xbf16>
    %cst_18 = arith.constant dense<0.000000e+00> : vector<16x400xf32>
    %26 = tpu.matmul %24, %25, %cst_18 {dimension_numbers = #tpu.dot_dimension_numbers<[1], [0], [0], [1], [0, 0, 1, 1], [], []>} : vector<16x208xbf16>, vector<208x400xbf16>, vector<16x400xf32> -> vector<16x400xf32>
    %c3 = arith.constant 3 : index
    %c0_19 = arith.constant 0 : index
    %27 = vector.load %arg6[%c3, %c0_19] : memref<5x512xf32, #tpu.memory_space<vmem>>, vector<1x400xf32>
    %28 = vector.broadcast %27 : vector<1x400xf32> to vector<16x400xf32>
    %29 = arith.addf %26, %28 : vector<16x400xf32>
    %cst_20 = arith.constant 0.000000e+00 : f32
    %30 = vector.broadcast %cst_20 : f32 to vector<16x400xf32>
    %31 = arith.maximumf %29, %30 : vector<16x400xf32>
    %32 = arith.truncf %31 : vector<16x400xf32> to vector<16x400xbf16>
    %c0_21 = arith.constant 0 : index
    %c0_22 = arith.constant 0 : index
    %33 = vector.load %arg5[%c0_21, %c0_22] : memref<400x128xbf16, #tpu.memory_space<vmem>>, vector<400x128xbf16>
    %cst_23 = arith.constant dense<0.000000e+00> : vector<16x128xf32>
    %34 = tpu.matmul %32, %33, %cst_23 {dimension_numbers = #tpu.dot_dimension_numbers<[1], [0], [0], [1], [0, 0, 1, 1], [], []>} : vector<16x400xbf16>, vector<400x128xbf16>, vector<16x128xf32> -> vector<16x128xf32>
    %c4 = arith.constant 4 : index
    %c0_24 = arith.constant 0 : index
    %35 = vector.load %arg6[%c4, %c0_24] : memref<5x512xf32, #tpu.memory_space<vmem>>, vector<1x128xf32>
    %36 = vector.broadcast %35 : vector<1x128xf32> to vector<16x128xf32>
    %37 = arith.addf %34, %36 : vector<16x128xf32>
    %c0_25 = arith.constant 0 : index
    %c0_26 = arith.constant 0 : index
    %38 = vector.load %arg7[%c0_25, %c0_26] : memref<16x128xf32, #tpu.memory_space<vmem>>, vector<16x128xf32>
    tpu.vector_store %arg7[%c0_25, %c0_26], %37 {strides = array<i32>} : memref<16x128xf32, #tpu.memory_space<vmem>>, vector<16x128xf32>,
    return
  }
}

</mosaic_0001>

<bundles_post_ra>
// kernel: fwd.1
= control target key start
LH: loop header
LB: loop body
LE: loop exit
PB: predicated region body
PF: predicated region fallthrough
CT: control target
= control target key end

     0   :  { %vm43_vm0 = vcmask 130048   ;;  %vm97_vm1 = vcmask 523264   ;;  %vm209_vm2 = vcmask 916480   ;;  %vm570_vm3 = vcmask 654336   ;;  %s2016_s1 = inlined_call_operand.vmem [shape: bf16[16,64], index: 1, kind: input, shape index: {}]   ;;  %s2017_s0 = inlined_call_operand.vmem [shape: bf16[16,16], index: 0, kind: input, shape index: {}]   ;;  %s2018_s2 = inlined_call_operand.vmem [shape: bf16[64,112], index: 2, kind: input, shape index: {}]   ;;  %s2019_s3 = inlined_call_operand.vmem [shape: bf16[112,208], index: 3, kind: input, shape index: {}]   ;;  %s2020_s6 = inlined_call_operand.vmem [shape: f32[5,512], index: 6, kind: input, shape index: {}]   ;;  %s2021_s4 = inlined_call_operand.vmem [shape: bf16[208,400], index: 4, kind: input, shape index: {}]   ;;  %s2022_s5 = inlined_call_operand.vmem [shape: bf16[400,128], index: 5, kind: input, shape index: {}]   ;;  %s2023_s7 = inlined_call_operand.vmem [shape: f32[16,128], index: 7, kind: output, shape index: {}]  }
   0x1   :  { %v1364_v0 = vld [vmem:[%s2016_s1] sm:$0xff]  ;;  %v1368_v2 = vld [vmem:[%s2018_s2 + $0x18] sm:$0xff]  ;;  %v1367_v3 = vld [vmem:[%s2018_s2 + $0x10] sm:$0xff] }
   0x2   :  { %v1363_v1 = vld [vmem:[%s2017_s0] sm:$0xff]  ;;  %54 = vmatpush.bf16.msra.mxu0 %v1364_v0  ;;  %105 = vmatpush.bf16.msra.mxu1 %v1368_v2  ;;  %v1366_v4 = vld [vmem:[%s2018_s2 + $0x8] sm:$0xff]  ;;  %v1033_v11 = vld [vmem:[%s2019_s3 + $0x50] sm:$0xf] }
   0x3   :  { %v1365_v5 = vld [vmem:[%s2018_s2] sm:$0xff]  ;;  %v1382_v7 = vld [vmem:[%s2019_s3 + $0x64] sm:$0xf0]  ;;  %v1043_v10 = vld [vmem:[%s2019_s3 + $0x68] sm:$0xf0] }
   0x4   :  { %v1041_v6 = vld [vmem:[%s2019_s3 + $0x60] sm:$0xf]  ;;  %v1381_v8 = vld [vmem:[%s2019_s3 + $0x64] sm:$0xf]  ;;  %v1380_v12 = vld [vmem:[%s2019_s3 + $0x54] sm:$0xf0] }
   0x5   :  { %972 = vmatmul.msk.bf16.vlgmr.msra.gmra.mxu0 %vm43_vm0, %v1363_v1  ;;  %v1042_v9 = vor.u32 %v1382_v7, %v1041_v6  ;;  %v1046_v13 = vor.u32 %v1381_v8, %v1043_v10  ;;  %v1379_v14 = vld [vmem:[%s2019_s3 + $0x54] sm:$0xf]  ;;  %v1035_v15 = vld [vmem:[%s2019_s3 + $0x58] sm:$0xf0]  ;;  %v1034_v16 = vor.u32 %v1380_v12, %v1033_v11  ;;  %v1025_v18 = vld [vmem:[%s2019_s3 + $0x40] sm:$0xf] }
   0x6   :  { %106 = vmatpush.bf16.msra.mxu1 %v1367_v3  ;;  %v1038_v17 = vor.u32 %v1379_v14, %v1035_v15  ;;  %v1378_v19 = vld [vmem:[%s2019_s3 + $0x44] sm:$0xf0]  ;;  %v1377_v20 = vld [vmem:[%s2019_s3 + $0x44] sm:$0xf]  ;;  %v1027_v21 = vld [vmem:[%s2019_s3 + $0x48] sm:$0xf0] }
   0x7   :  { %214 = vmatpush.bf16.msra.mxu2 %v1042_v9  ;;  %228 = vmatpush.bf16.msra.mxu3 %v1046_v13  ;;  %v1026_v22 = vor.u32 %v1378_v19, %v1025_v18  ;;  %v1030_v23 = vor.u32 %v1377_v20, %v1027_v21  ;;  %v31_v25 = vld [vmem:[%s2020_s6] ss:$0 sm:$0xff]  ;;  %v1017_v32 = vld [vmem:[%s2019_s3 + $0x30] sm:$0xf]  ;;  %v1376_v33 = vld [vmem:[%s2019_s3 + $0x34] sm:$0xf0] }
   0x8   :  { %v1375_v34 = vld [vmem:[%s2019_s3 + $0x34] sm:$0xf]  ;;  %v1018_v35 = vor.u32 %v1376_v33, %v1017_v32  ;;  %v1019_v36 = vld [vmem:[%s2019_s3 + $0x38] sm:$0xf0]  ;;  %v1009_v38 = vld [vmem:[%s2019_s3 + $0x20] sm:$0xf] }
   0x9   :  { %v1022_v37 = vor.u32 %v1375_v34, %v1019_v36  ;;  %v1374_v39 = vld [vmem:[%s2019_s3 + $0x24] sm:$0xf0]  ;;  %v1373_v40 = vld [vmem:[%s2019_s3 + $0x24] sm:$0xf]  ;;  %v1011_v42 = vld [vmem:[%s2019_s3 + $0x28] sm:$0xf0] }
   0xa   :  { %107 = vmatpush.bf16.msra.mxu1 %v1366_v4  ;;  %v1010_v41 = vor.u32 %v1374_v39, %v1009_v38  ;;  %v1014_v43 = vor.u32 %v1373_v40, %v1011_v42  ;;  %v1001_v44 = vld [vmem:[%s2019_s3 + $0x10] sm:$0xf]  ;;  %v1372_v45 = vld [vmem:[%s2019_s3 + $0x14] sm:$0xf0]  ;;  %v1371_v46 = vld [vmem:[%s2019_s3 + $0x14] sm:$0xf] }
   0xb   :  { %215 = vmatpush.bf16.msra.mxu2 %v1034_v16  ;;  %229 = vmatpush.bf16.msra.mxu3 %v1038_v17  ;;  %v1002_v47 = vor.u32 %v1372_v45, %v1001_v44  ;;  %v1003_v48 = vld [vmem:[%s2019_s3 + $0x18] sm:$0xf0]  ;;  %v993_v50 = vld [vmem:[%s2019_s3] sm:$0xf]  ;;  %v1370_v51 = vld [vmem:[%s2019_s3 + $0x4] sm:$0xf0] }
   0xc   :  { %v1006_v49 = vor.u32 %v1371_v46, %v1003_v48  ;;  %v1369_v52 = vld [vmem:[%s2019_s3 + $0x4] sm:$0xf]  ;;  %v994_v53 = vor.u32 %v1370_v51, %v993_v50  ;;  %v995_v54 = vld [vmem:[%s2019_s3 + $0x8] sm:$0xf0]  ;;  %v1164_v56 = vld [vmem:[%s2021_s4 + $0xe0] sm:$0xf] }
   0xd   :  { %v998_v55 = vor.u32 %v1369_v52, %v995_v54  ;;  %v1413_v57 = vld [vmem:[%s2021_s4 + $0xec] sm:$0xf0]  ;;  %v1148_v58 = vld [vmem:[%s2021_s4 + $0xc0] sm:$0xf]  ;;  %v1431_v61 = vld [vmem:[%s2021_s4 + $0x184] sm:$0xf] }
   0xe   :  { %108 = vmatpush.bf16.msra.mxu1 %v1365_v5  ;;  %v1165_v59 = vor.u32 %v1413_v57, %v1164_v56  ;;  %v1409_v60 = vld [vmem:[%s2021_s4 + $0xcc] sm:$0xf0]  ;;  %v1246_v63 = vld [vmem:[%s2021_s4 + $0x190] sm:$0xf0]  ;;  %v1411_v0 = vld [vmem:[%s2021_s4 + $0xe4] sm:$0xf] }
   0xf   :  { %216 = vmatpush.bf16.msra.mxu2 %v1026_v22  ;;  %230 = vmatpush.bf16.msra.mxu3 %v1030_v23  ;;  %v1149_v62 = vor.u32 %v1409_v60, %v1148_v58  ;;  %v1166_v1 = vld [vmem:[%s2021_s4 + $0xf0] sm:$0xf0]  ;;  %v1132_v2 = vld [vmem:[%s2021_s4 + $0xa0] sm:$0xf]  ;;  %v1405_v3 = vld [vmem:[%s2021_s4 + $0xac] sm:$0xf0]  ;;  %v1249_v4 = vor.u32 %v1431_v61, %v1246_v63 }
  0x10   :  { %574 = vmatpush.bf16.msrb.mxu0 %v1165_v59  ;;  %v1169_v5 = vor.u32 %v1411_v0, %v1166_v1  ;;  %v1427_v6 = vld [vmem:[%s2021_s4 + $0x164] sm:$0xf]  ;;  %v1230_v7 = vld [vmem:[%s2021_s4 + $0x170] sm:$0xf0]  ;;  %v1116_v10 = vld [vmem:[%s2021_s4 + $0x80] sm:$0xf]  ;;  %v1133_v14 = vor.u32 %v1405_v3, %v1132_v2 }
  0x11   :  { %v1407_v8 = vld [vmem:[%s2021_s4 + $0xc4] sm:$0xf]  ;;  %v1150_v9 = vld [vmem:[%s2021_s4 + $0xd0] sm:$0xf0]  ;;  %v1233_v11 = vor.u32 %v1427_v6, %v1230_v7  ;;  %v1401_v18 = vld [vmem:[%s2021_s4 + $0x8c] sm:$0xf0] }
  0x12   :  { %v1153_v12 = vor.u32 %v1407_v8, %v1150_v9  ;;  %v1423_v13 = vld [vmem:[%s2021_s4 + $0x144] sm:$0xf]  ;;  %v1214_v15 = vld [vmem:[%s2021_s4 + $0x150] sm:$0xf0]  ;;  %v1244_v19 = vld [vmem:[%s2021_s4 + $0x180] sm:$0xf] }
  0x13   :  { %217 = vmatpush.bf16.msra.mxu2 %v1018_v35  ;;  %231 = vmatpush.bf16.msra.mxu3 %v1022_v37  ;;  %v1403_v16 = vld [vmem:[%s2021_s4 + $0xa4] sm:$0xf]  ;;  %v1134_v17 = vld [vmem:[%s2021_s4 + $0xb0] sm:$0xf0]  ;;  %v1433_v20 = vld [vmem:[%s2021_s4 + $0x18c] sm:$0xf0]  ;;  %v1217_v22 = vor.u32 %v1423_v13, %v1214_v15 }
  0x14   :  { %575 = vmatpush.bf16.msrb.mxu0 %v1149_v62  ;;  %v1245_v21 = vor.u32 %v1433_v20, %v1244_v19  ;;  %v1137_v23 = vor.u32 %v1403_v16, %v1134_v17  ;;  %v1397_v32 = vld [vmem:[%s2021_s4 + $0x6c] sm:$0xf0]  ;;  %v1415_v37 = vld [vmem:[%s2021_s4 + $0x104] sm:$0xf]  ;;  %v1182_v38 = vld [vmem:[%s2021_s4 + $0x110] sm:$0xf0] }
  0x15   :  { %v1084_v39 = vld [vmem:[%s2021_s4 + $0x40] sm:$0xf]  ;;  %v1393_v40 = vld [vmem:[%s2021_s4 + $0x4c] sm:$0xf0]  ;;  %v1185_v42 = vor.u32 %v1415_v37, %v1182_v38  ;;  %v1395_v57 = vld [vmem:[%s2021_s4 + $0x64] sm:$0xf] }
  0x16   :  { %591 = vmatpush.bf16.msrb.mxu1 %v1245_v21  ;;  %v1068_v44 = vld [vmem:[%s2021_s4 + $0x20] sm:$0xf]  ;;  %v1389_v45 = vld [vmem:[%s2021_s4 + $0x2c] sm:$0xf0]  ;;  %v1102_v58 = vld [vmem:[%s2021_s4 + $0x70] sm:$0xf0] }
  0x17   :  { %218 = vmatpush.bf16.msra.mxu2 %v1010_v41  ;;  %232 = vmatpush.bf16.msra.mxu3 %v1014_v43  ;;  %v1085_v43 = vor.u32 %v1393_v40, %v1084_v39  ;;  %v72_v46 = vld [vmem:[%s2020_s6 + $0x1] ss:$0 sm:$0xff]  ;;  %v1385_v50 = vld [vmem:[%s2021_s4 + $0xc] sm:$0xf0]  ;;  %v1172_v59 = vld [vmem:[%s2021_s4 + $0xe8] sm:$0xf]  ;;  %v1105_v60 = vor.u32 %v1395_v57, %v1102_v58 }
  0x18   :  { %576 = vmatpush.bf16.msrb.mxu0 %v1133_v14  ;;  %v1414_v61 = vld [vmem:[%s2021_s4 + $0xf4] sm:$0xf0]  ;;  %v1412_v62 = vld [vmem:[%s2021_s4 + $0xec] sm:$0xf]  ;;  %v1174_v63 = vld [vmem:[%s2021_s4 + $0xf8] sm:$0xf0] }
  0x19   :  { %v1173_v0 = vor.u32 %v1414_v61, %v1172_v59  ;;  %v1177_v1 = vor.u32 %v1412_v62, %v1174_v63  ;;  %v1212_v2 = vld [vmem:[%s2021_s4 + $0x140] sm:$0xf]  ;;  %v1425_v3 = vld [vmem:[%s2021_s4 + $0x14c] sm:$0xf0]  ;;  %v1086_v6 = vld [vmem:[%s2021_s4 + $0x50] sm:$0xf0] }
  0x1a   :  { %v1156_v7 = vld [vmem:[%s2021_s4 + $0xc8] sm:$0xf]  ;;  %v1410_v9 = vld [vmem:[%s2021_s4 + $0xd4] sm:$0xf0]  ;;  %v1196_v14 = vld [vmem:[%s2021_s4 + $0x120] sm:$0xf] }
  0x1b   :  { %219 = vmatpush.bf16.msra.mxu2 %v1002_v47  ;;  %233 = vmatpush.bf16.msra.mxu3 %v1006_v49  ;;  %v1069_v47 = vor.u32 %v1389_v45, %v1068_v44  ;;  %v1052_v49 = vld [vmem:[%s2021_s4] sm:$0xf]  ;;  %v1421_v15 = vld [vmem:[%s2021_s4 + $0x12c] sm:$0xf0]  ;;  %v1387_v17 = vld [vmem:[%s2021_s4 + $0x24] sm:$0xf] }
  0x1c   :  { %v1197_v16 = vor.u32 %v1421_v15, %v1196_v14  ;;  %v1140_v19 = vld [vmem:[%s2021_s4 + $0xa8] sm:$0xf]  ;;  %v1406_v21 = vld [vmem:[%s2021_s4 + $0xb4] sm:$0xf0]  ;;  %v1400_v37 = vld [vmem:[%s2021_s4 + $0x8c] sm:$0xf] }
  0x1d   :  { %v1126_v38 = vld [vmem:[%s2021_s4 + $0x98] sm:$0xf0]  ;;  %v1108_v44 = vld [vmem:[%s2021_s4 + $0x68] sm:$0xf]  ;;  %v1398_v45 = vld [vmem:[%s2021_s4 + $0x74] sm:$0xf0] }
  0x1e   :  { %v1129_v40 = vor.u32 %v1400_v37, %v1126_v38  ;;  %v1204_v59 = vld [vmem:[%s2021_s4 + $0x128] sm:$0xf]  ;;  %v1390_v62 = vld [vmem:[%s2021_s4 + $0x34] sm:$0xf0]  ;;  %v1388_v63 = vld [vmem:[%s2021_s4 + $0x2c] sm:$0xf] }
  0x1f   :  { %220 = vmatpush.bf16.msra.mxu2 %v994_v53  ;;  %234 = vmatpush.bf16.msra.mxu3 %v998_v55  ;;  %v1053_v53 = vor.u32 %v1385_v50, %v1052_v49  ;;  %v1220_v50 = vld [vmem:[%s2021_s4 + $0x148] sm:$0xf]  ;;  %v1441_v38 = vld [vmem:[%s2022_s5 + $0x30] sm:$0xff] }
  0x20   :  { %v1076_v61 = vld [vmem:[%s2021_s4 + $0x28] sm:$0xf] }
  0x23   :  { %619 = vmatpush.bf16.msrb.mxu3 %v1249_v4  ;;  %602 = vmatpush.bf16.msrb.mxu2 %v1169_v5  ;;  %v1213_v4 = vor.u32 %v1425_v3, %v1212_v2  ;;  %v1391_v5 = vld [vmem:[%s2021_s4 + $0x44] sm:$0xf]  ;;  %v1077_v2 = vor.u32 %v1390_v62, %v1076_v61  ;;  %v1188_v3 = vld [vmem:[%s2021_s4 + $0x108] sm:$0xf] }
  0x24   :  { %v1089_v8 = vor.u32 %v1391_v5, %v1086_v6  ;;  %v1060_v6 = vld [vmem:[%s2021_s4 + $0x8] sm:$0xf]  ;;  %v1435_v61 = vld [vmem:[%s2022_s5] sm:$0xff] }
  0x25   :  { %v1455_v62 = vld [vmem:[%s2022_s5 + $0xa0] sm:$0xff] }
  0x27   :  { %620 = vmatpush.bf16.msrb.mxu3 %v1233_v11  ;;  %603 = vmatpush.bf16.msrb.mxu2 %v1153_v12  ;;  %v1158_v11 = vld [vmem:[%s2021_s4 + $0xd8] sm:$0xf0]  ;;  %v1157_v12 = vor.u32 %v1410_v9, %v1156_v7  ;;  %v1386_v7 = vld [vmem:[%s2021_s4 + $0x14] sm:$0xf0] }
  0x28   :  { %v1062_v9 = vld [vmem:[%s2021_s4 + $0x18] sm:$0xf0] }
  0x2b   :  { %621 = vmatpush.bf16.msrb.mxu3 %v1217_v22  ;;  %604 = vmatpush.bf16.msrb.mxu2 %v1137_v23  ;;  %v1404_v22 = vld [vmem:[%s2021_s4 + $0xac] sm:$0xf]  ;;  %v1142_v23 = vld [vmem:[%s2021_s4 + $0xb8] sm:$0xf0] }
  0x82   :  { %v56_v24 = vpop.f32.mrf.mxu0 }
  0x83   :  { %v57_v26 = vadd.f32 %v56_v24, %v31_v25  ;;  %v1419_v24 = vld [vmem:[%s2021_s4 + $0x124] sm:$0xf] }
  0x85   :  { %v61_v29 = vmax.f32 %v57_v26, 0.0  ;;  %v1228_v26 = vld [vmem:[%s2021_s4 + $0x160] sm:$0xf] }
  0x8a   :  { %v58_v27 = vpop.f32.mrf.mxu0 }
  0x8b   :  { %v59_v28 = vadd.f32 %v58_v27, %v31_v25  ;;  %v1198_v25 = vld [vmem:[%s2021_s4 + $0x130] sm:$0xf0]  ;;  %v1117_v27 = vor.u32 %v1401_v18, %v1116_v10  ;;  %v1408_v10 = vld [vmem:[%s2021_s4 + $0xcc] sm:$0xf] }
  0x8c   :  { %v1201_v34 = vor.u32 %v1419_v24, %v1198_v25  ;;  %v1161_v13 = vor.u32 %v1408_v10, %v1158_v11  ;;  %v1070_v18 = vld [vmem:[%s2021_s4 + $0x30] sm:$0xf0]  ;;  %v1141_v24 = vor.u32 %v1406_v21, %v1140_v19  ;;  %v1145_v25 = vor.u32 %v1404_v22, %v1142_v23 }
  0x8d   :  { %v62_v30 = vmax.f32 %v59_v28, 0.0  ;;  %v1399_v28 = vld [vmem:[%s2021_s4 + $0x84] sm:$0xf]  ;;  %577 = vmatpush.bf16.msrb.mxu0 %v1117_v27  ;;  %v1073_v20 = vor.u32 %v1387_v17, %v1070_v18  ;;  %v1417_v27 = vld [vmem:[%s2021_s4 + $0x10c] sm:$0xf0]  ;;  %v1061_v11 = vor.u32 %v1386_v7, %v1060_v6 }
  0x8e   :  { %622 = vmatpush.bf16.msrb.mxu3 %v1201_v34  ;;  %v1124_v34 = vld [vmem:[%s2021_s4 + $0x88] sm:$0xf] }
  0x8f   :  { %v63_v31 = vpack.c.bf16 %v62_v30, %v61_v29  ;;  %v1118_v29 = vld [vmem:[%s2021_s4 + $0x90] sm:$0xf0]  ;;  %v1429_v30 = vld [vmem:[%s2021_s4 + $0x16c] sm:$0xf0] }
  0x90   :  { %v1229_v33 = vor.u32 %v1429_v30, %v1228_v26  ;;  %v1121_v35 = vor.u32 %v1399_v28, %v1118_v29  ;;  %v1180_v26 = vld [vmem:[%s2021_s4 + $0x100] sm:$0xf]  ;;  %v1252_v29 = vld [vmem:[%s2021_s4 + $0x188] sm:$0xf]  ;;  %v1434_v30 = vld [vmem:[%s2021_s4 + $0x194] sm:$0xf0] }
  0x91   :  { %989 = vmatmul.msk.bf16.vlgmr.msra.gmra.mxu1 %vm97_vm1, %v63_v31  ;;  %v1100_v31 = vld [vmem:[%s2021_s4 + $0x60] sm:$0xf]  ;;  %v1181_v28 = vor.u32 %v1417_v27, %v1180_v26 }
  0x92   :  { %v1101_v36 = vor.u32 %v1397_v32, %v1100_v31  ;;  %592 = vmatpush.bf16.msrb.mxu1 %v1229_v33  ;;  %605 = vmatpush.bf16.msrb.mxu2 %v1121_v35  ;;  %v1253_v31 = vor.u32 %v1434_v30, %v1252_v29  ;;  %v1383_v32 = vld [vmem:[%s2021_s4 + $0x4] sm:$0xf]  ;;  %v1054_v33 = vld [vmem:[%s2021_s4 + $0x10] sm:$0xf0] }
  0x93   :  { %623 = vmatpush.bf16.msrb.mxu3 %v1185_v42  ;;  %v1057_v35 = vor.u32 %v1383_v32, %v1054_v33  ;;  %v1430_v42 = vld [vmem:[%s2021_s4 + $0x174] sm:$0xf0]  ;;  %v1428_v33 = vld [vmem:[%s2021_s4 + $0x16c] sm:$0xf] }
  0x94   :  { %578 = vmatpush.bf16.msrb.mxu0 %v1101_v36  ;;  %v1402_v36 = vld [vmem:[%s2021_s4 + $0x94] sm:$0xf0] }
  0x95   :  { %v1125_v39 = vor.u32 %v1402_v36, %v1124_v34  ;;  %v1238_v34 = vld [vmem:[%s2021_s4 + $0x178] sm:$0xf0] }
  0x96   :  { %606 = vmatpush.bf16.msrb.mxu2 %v1105_v60  ;;  %593 = vmatpush.bf16.msrb.mxu1 %v1213_v4  ;;  %v1422_v60 = vld [vmem:[%s2021_s4 + $0x134] sm:$0xf0]  ;;  %v1241_v37 = vor.u32 %v1428_v33, %v1238_v34 }
  0x97   :  { %v1418_v4 = vld [vmem:[%s2021_s4 + $0x114] sm:$0xf0] }
  0x98   :  { %579 = vmatpush.bf16.msrb.mxu0 %v1085_v43  ;;  %v1189_v10 = vor.u32 %v1418_v4, %v1188_v3  ;;  %v1450_v36 = vld [vmem:[%s2022_s5 + $0x78] sm:$0xff]  ;;  %v1452_v3 = vld [vmem:[%s2022_s5 + $0x88] sm:$0xff]  ;;  %v1451_v4 = vld [vmem:[%s2022_s5 + $0x80] sm:$0xff] }
  0x9a   :  { %607 = vmatpush.bf16.msrb.mxu2 %v1089_v8  ;;  %594 = vmatpush.bf16.msrb.mxu1 %v1197_v16  ;;  %v1384_v8 = vld [vmem:[%s2021_s4 + $0xc] sm:$0xf] }
  0x9c   :  { %580 = vmatpush.bf16.msrb.mxu0 %v1069_v47  ;;  %v1396_v47 = vld [vmem:[%s2021_s4 + $0x6c] sm:$0xf] }
  0x9e   :  { %608 = vmatpush.bf16.msrb.mxu2 %v1073_v20  ;;  %595 = vmatpush.bf16.msrb.mxu1 %v1181_v28 }
  0xa0   :  { %581 = vmatpush.bf16.msrb.mxu0 %v1053_v53 }
  0xa2   :  { %647 = vmatpush.bf16.msra.mxu1 %v1253_v31  ;;  %609 = vmatpush.bf16.msrb.mxu2 %v1057_v35  ;;  %v1442_v35 = vld [vmem:[%s2022_s5 + $0x38] sm:$0xff] }
  0xa4   :  { %630 = vmatpush.bf16.msra.mxu0 %v1173_v0  ;;  %v1078_v0 = vld [vmem:[%s2021_s4 + $0x38] sm:$0xf0] }
  0xa5   :  { %v1081_v5 = vor.u32 %v1388_v63, %v1078_v0  ;;  %v1444_v63 = vld [vmem:[%s2022_s5 + $0x48] sm:$0xff]  ;;  %v1454_v0 = vld [vmem:[%s2022_s5 + $0x98] sm:$0xff] }
  0xa8   :  { %631 = vmatpush.bf16.msra.mxu0 %v1157_v12  ;;  %v1065_v12 = vor.u32 %v1384_v8, %v1062_v9  ;;  %v1459_v8 = vld [vmem:[%s2022_s5 + $0xc0] sm:$0xff] }
  0xac   :  { %632 = vmatpush.bf16.msra.mxu0 %v1141_v24  ;;  %v1432_v24 = vld [vmem:[%s2021_s4 + $0x18c] sm:$0xf] }
  0xb0   :  { %633 = vmatpush.bf16.msra.mxu0 %v1125_v39  ;;  %v1424_v39 = vld [vmem:[%s2021_s4 + $0x14c] sm:$0xf] }
 0x10e   :  { %v110_v41 = vpop.f32.mrf.mxu1 }
 0x10f   :  { %v111_v48 = vadd.f32 %v110_v41, %v72_v46  ;;  %v1236_v41 = vld [vmem:[%s2021_s4 + $0x168] sm:$0xf] }
 0x110   :  { %v1237_v43 = vor.u32 %v1430_v42, %v1236_v41  ;;  %v1449_v41 = vld [vmem:[%s2022_s5 + $0x70] sm:$0xff] }
 0x111   :  { %v115_v54 = vmax.f32 %v111_v48, 0.0  ;;  %v1110_v48 = vld [vmem:[%s2021_s4 + $0x78] sm:$0xf0] }
 0x112   :  { %648 = vmatpush.bf16.msra.mxu1 %v1237_v43  ;;  %v1113_v49 = vor.u32 %v1396_v47, %v1110_v48  ;;  %v1440_v43 = vld [vmem:[%s2022_s5 + $0x28] sm:$0xff]  ;;  %v1439_v47 = vld [vmem:[%s2022_s5 + $0x20] sm:$0xff] }
 0x113   :  { %v1416_v48 = vld [vmem:[%s2021_s4 + $0x10c] sm:$0xf] }
 0x116   :  { %v112_v51 = vpop.f32.mrf.mxu1 }
 0x117   :  { %v113_v52 = vadd.f32 %v112_v51, %v72_v46  ;;  %v1109_v46 = vor.u32 %v1398_v45, %v1108_v44  ;;  %v1426_v51 = vld [vmem:[%s2021_s4 + $0x154] sm:$0xf0]  ;;  %v1420_v44 = vld [vmem:[%s2021_s4 + $0x12c] sm:$0xf]  ;;  %v1206_v45 = vld [vmem:[%s2021_s4 + $0x138] sm:$0xf0] }
 0x118   :  { %v1221_v53 = vor.u32 %v1426_v51, %v1220_v50  ;;  %v1448_v51 = vld [vmem:[%s2022_s5 + $0x68] sm:$0xff] }
 0x119   :  { %v116_v55 = vmax.f32 %v113_v52, 0.0  ;;  %v1092_v52 = vld [vmem:[%s2021_s4 + $0x48] sm:$0xf]  ;;  %634 = vmatpush.bf16.msra.mxu0 %v1109_v46  ;;  %v1209_v46 = vor.u32 %v1420_v44, %v1206_v45 }
 0x11a   :  { %649 = vmatpush.bf16.msra.mxu1 %v1221_v53  ;;  %v1458_v53 = vld [vmem:[%s2022_s5 + $0xb8] sm:$0xff] }
 0x11b   :  { %v117_v56 = vpack.c.bf16 %v116_v55, %v115_v54  ;;  %v1394_v54 = vld [vmem:[%s2021_s4 + $0x54] sm:$0xf0]  ;;  %v1392_v55 = vld [vmem:[%s2021_s4 + $0x4c] sm:$0xf] }
 0x11c   :  { %v1093_v57 = vor.u32 %v1394_v54, %v1092_v52  ;;  %v1438_v52 = vld [vmem:[%s2022_s5 + $0x18] sm:$0xff]  ;;  %v1447_v54 = vld [vmem:[%s2022_s5 + $0x60] sm:$0xff] }
 0x11d   :  { %1047 = vmatmul.msk.bf16.vlgmr.msra.gmra.mxu2 %vm209_vm2, %v117_v56  ;;  %1048 = vmatmul.msk.bf16.vlgmr.msra.gmra.mxu3 %vm209_vm2, %v117_v56  ;;  %v1094_v56 = vld [vmem:[%s2021_s4 + $0x58] sm:$0xf0] }
 0x11e   :  { %658 = vmatpush.bf16.msra.mxu3 %v1177_v1  ;;  %v1097_v58 = vor.u32 %v1392_v55, %v1094_v56  ;;  %v1205_v1 = vor.u32 %v1422_v60, %v1204_v59  ;;  %635 = vmatpush.bf16.msra.mxu0 %v1093_v57  ;;  %v1437_v55 = vld [vmem:[%s2022_s5 + $0x10] sm:$0xff]  ;;  %v1446_v57 = vld [vmem:[%s2022_s5 + $0x58] sm:$0xff]  ;;  %v1456_v59 = vld [vmem:[%s2022_s5 + $0xa8] sm:$0xff] }
 0x11f   :  { %902 = vmatpush.bf16.msra.mxu2 %v1442_v35  ;;  %v1457_v56 = vld [vmem:[%s2022_s5 + $0xb0] sm:$0xff] }
 0x120   :  { %650 = vmatpush.bf16.msra.mxu1 %v1205_v1  ;;  %v1445_v60 = vld [vmem:[%s2022_s5 + $0x50] sm:$0xff]  ;;  %v1443_v1 = vld [vmem:[%s2022_s5 + $0x40] sm:$0xff] }
 0x122   :  { %659 = vmatpush.bf16.msra.mxu3 %v1161_v13  ;;  %636 = vmatpush.bf16.msra.mxu0 %v1077_v2  ;;  %v990_v13 = vld [vmem:[%s2020_s6 + $0x2] ss:$8 sm:$0x3]  ;;  %v1453_v2 = vld [vmem:[%s2022_s5 + $0x90] sm:$0xff] }
 0x123   :  { %v135_v16 = vperm.slane %v990_v13, 0  ;;  %v136_v17 = vperm.slane %v990_v13, 1  ;;  %903 = vmatpush.bf16.msra.mxu2 %v1441_v38 }
 0x124   :  { %651 = vmatpush.bf16.msra.mxu1 %v1189_v10 }
 0x126   :  { %660 = vmatpush.bf16.msra.mxu3 %v1145_v25  ;;  %637 = vmatpush.bf16.msra.mxu0 %v1061_v11  ;;  %v1254_v25 = vld [vmem:[%s2021_s4 + $0x198] sm:$0xf0] }
 0x127   :  { %v1257_v32 = vor.u32 %v1432_v24, %v1254_v25  ;;  %904 = vmatpush.bf16.msra.mxu2 %v1440_v43 }
 0x12a   :  { %661 = vmatpush.bf16.msra.mxu3 %v1129_v40  ;;  %v1222_v40 = vld [vmem:[%s2021_s4 + $0x158] sm:$0xf0] }
 0x12b   :  { %v1225_v42 = vor.u32 %v1424_v39, %v1222_v40  ;;  %905 = vmatpush.bf16.msra.mxu2 %v1439_v47 }
 0x12e   :  { %662 = vmatpush.bf16.msra.mxu3 %v1113_v49  ;;  %v1190_v49 = vld [vmem:[%s2021_s4 + $0x118] sm:$0xf0] }
 0x12f   :  { %v1193_v50 = vor.u32 %v1416_v48, %v1190_v49  ;;  %906 = vmatpush.bf16.msra.mxu2 %v1438_v52 }
 0x132   :  { %663 = vmatpush.bf16.msra.mxu3 %v1097_v58  ;;  %v1436_v58 = vld [vmem:[%s2022_s5 + $0x8] sm:$0xff] }
 0x133   :  { %907 = vmatpush.bf16.msra.mxu2 %v1437_v55 }
 0x136   :  { %664 = vmatpush.bf16.msra.mxu3 %v1081_v5  ;;  %v1049_v5 = vld [vmem:[%s2020_s6 + $0x3] ss:$8 sm:$0xf] }
 0x137   :  { %908 = vmatpush.bf16.msra.mxu2 %v1436_v58  ;;  %v302_v9 = vperm.slane %v1049_v5, 0  ;;  %v303_v13 = vperm.slane %v1049_v5, 1  ;;  %v305_v45 = vperm.slane %v1049_v5, 3 }
 0x13a   :  { %665 = vmatpush.bf16.msra.mxu3 %v1065_v12 }
 0x13b   :  { %909 = vmatpush.bf16.msra.mxu2 %v1435_v61 }
 0x1a0   :  { %v222_v14 = vpop.f32.mrf.mxu2  ;;  %v236_v15 = vpop.f32.mrf.mxu3 }
 0x1a1   :  { %v223_v18 = vadd.f32 %v222_v14, %v135_v16  ;;  %v237_v19 = vadd.f32 %v236_v15, %v136_v17 }
 0x1a3   :  { %v241_v26 = vmax.f32 %v223_v18, 0.0  ;;  %v242_v27 = vmax.f32 %v237_v19, 0.0 }
 0x1a8   :  { %v224_v20 = vpop.f32.mrf.mxu2  ;;  %v238_v21 = vpop.f32.mrf.mxu3 }
 0x1a9   :  { %v225_v22 = vadd.f32 %v224_v20, %v135_v16  ;;  %v239_v23 = vadd.f32 %v238_v21, %v136_v17 }
 0x1ab   :  { %v243_v28 = vmax.f32 %v225_v22, 0.0  ;;  %v244_v29 = vmax.f32 %v239_v23, 0.0 }
 0x1ad   :  { %v245_v30 = vpack.c.bf16 %v243_v28, %v241_v26  ;;  %v246_v31 = vpack.c.bf16 %v244_v29, %v242_v27  ;;  %v304_v29 = vperm.slane %v1049_v5, 2 }
 0x1af   :  { %582 = vmatmul.bf16.vlgmr.msrb.gmra.mxu0 %v245_v30  ;;  %1258 = vmatmul.msk.bf16.vlgmr.msrb.gmra.mxu1 %vm570_vm3, %v246_v31 }
 0x1b0   :  { %610 = vmatmul.bf16.vlgmr.msrb.gmra.mxu2 %v245_v30  ;;  %1259 = vmatmul.msk.bf16.vlgmr.msrb.gmra.mxu3 %vm570_vm3, %v246_v31 }
 0x1b1   :  { %675 = vmatpush.bf16.msrb.mxu1 %v1257_v32  ;;  %916 = vmatpush.bf16.msrb.mxu0 %v1450_v36 }
 0x1b2   :  { %951 = vmatpush.bf16.msrb.mxu3 %v1459_v8 }
 0x1b5   :  { %676 = vmatpush.bf16.msrb.mxu1 %v1241_v37  ;;  %917 = vmatpush.bf16.msrb.mxu0 %v1449_v41 }
 0x1b9   :  { %677 = vmatpush.bf16.msrb.mxu1 %v1225_v42  ;;  %918 = vmatpush.bf16.msrb.mxu0 %v1448_v51 }
 0x1bd   :  { %678 = vmatpush.bf16.msrb.mxu1 %v1209_v46  ;;  %919 = vmatpush.bf16.msrb.mxu0 %v1447_v54 }
 0x1bf   :  { %638 = vmatmul.bf16.vlgmr.msra.gmra.mxu0 %v245_v30  ;;  %1260 = vmatmul.msk.bf16.vlgmr.msra.gmra.mxu1 %vm570_vm3, %v246_v31 }
 0x1c0   :  { %666 = vmatmul.bf16.vlgmr.msra.gmra.mxu3 %v245_v30 }
 0x1c1   :  { %679 = vmatpush.bf16.msrb.mxu1 %v1193_v50  ;;  %920 = vmatpush.bf16.msrb.mxu0 %v1446_v57 }
 0x1c5   :  { %930 = vmatpush.bf16.msra.mxu1 %v1458_v53  ;;  %921 = vmatpush.bf16.msrb.mxu0 %v1445_v60 }
 0x1c9   :  { %931 = vmatpush.bf16.msra.mxu1 %v1457_v56  ;;  %922 = vmatpush.bf16.msrb.mxu0 %v1444_v63  ;;  %v748_v56 = vld [vmem:[%s2020_s6 + $0x4] ss:$0 sm:$0xff] }
 0x1cd   :  { %932 = vmatpush.bf16.msra.mxu1 %v1456_v59  ;;  %923 = vmatpush.bf16.msrb.mxu0 %v1443_v1 }
 0x1cf   :  { %1261 = vmatmul.msk.bf16.vlgmr.msrb.gmra.mxu1 %vm570_vm3, %v246_v31 }
 0x1d1   :  { %933 = vmatpush.bf16.msra.mxu1 %v1455_v62 }
 0x1d5   :  { %934 = vmatpush.bf16.msra.mxu1 %v1454_v0 }
 0x1d9   :  { %935 = vmatpush.bf16.msra.mxu1 %v1453_v2 }
 0x1dd   :  { %936 = vmatpush.bf16.msra.mxu1 %v1452_v3 }
 0x1e1   :  { %937 = vmatpush.bf16.msra.mxu1 %v1451_v4 }
 0x22c   :  { %v583_v6 = vpop.f32.mrf.mxu0  ;;  %v597_v7 = vpop.f32.mrf.mxu1 }
 0x22d   :  { %v584_v10 = vadd.f32 %v583_v6, %v302_v9 }
 0x22f   :  { %v598_v16 = vadd.f32 %v597_v7, %v584_v10 }
 0x231   :  { %v686_v20 = vmax.f32 %v598_v16, 0.0 }
 0x233   :  { %v611_v11 = vpop.f32.mrf.mxu2  ;;  %v625_v12 = vpop.f32.mrf.mxu3 }
 0x234   :  { %v585_v14 = vpop.f32.mrf.mxu0  ;;  %v599_v15 = vpop.f32.mrf.mxu1  ;;  %v612_v19 = vadd.f32 %v611_v11, %v303_v13 }
 0x235   :  { %v586_v17 = vadd.f32 %v585_v14, %v302_v9 }
 0x236   :  { %v626_v25 = vadd.f32 %v625_v12, %v612_v19 }
 0x237   :  { %v600_v18 = vadd.f32 %v599_v15, %v586_v17 }
 0x238   :  { %v687_v31 = vmax.f32 %v626_v25, 0.0 }
 0x239   :  { %v690_v21 = vmax.f32 %v600_v18, 0.0 }
 0x23b   :  { %v694_v22 = vpack.c.bf16 %v690_v21, %v686_v20  ;;  %v613_v23 = vpop.f32.mrf.mxu2  ;;  %v627_v24 = vpop.f32.mrf.mxu3 }
 0x23c   :  { %v614_v26 = vadd.f32 %v613_v23, %v303_v13  ;;  %v639_v27 = vpop.f32.mrf.mxu0  ;;  %v653_v28 = vpop.f32.mrf.mxu1 }
 0x23d   :  { %910 = vmatmul.bf16.vlgmr.msra.gmra.mxu2 %v694_v22  ;;  %v640_v33 = vadd.f32 %v639_v27, %v304_v29 }
 0x23e   :  { %v628_v30 = vadd.f32 %v627_v24, %v614_v26 }
 0x23f   :  { %v654_v37 = vadd.f32 %v653_v28, %v640_v33 }
 0x240   :  { %v691_v32 = vmax.f32 %v628_v30, 0.0 }
 0x241   :  { %v688_v41 = vmax.f32 %v654_v37, 0.0 }
 0x242   :  { %v695_v34 = vpack.c.bf16 %v691_v32, %v687_v31 }
 0x243   :  { %v667_v39 = vpop.f32.mrf.mxu3 }
 0x244   :  { %924 = vmatmul.bf16.vlgmr.msrb.gmra.mxu0 %v695_v34  ;;  %v641_v35 = vpop.f32.mrf.mxu0  ;;  %v655_v36 = vpop.f32.mrf.mxu1  ;;  %v668_v47 = vadd.f32 %v667_v39, %v305_v45 }
 0x245   :  { %v642_v38 = vadd.f32 %v641_v35, %v304_v29 }
 0x247   :  { %v656_v40 = vadd.f32 %v655_v36, %v642_v38 }
 0x249   :  { %v692_v42 = vmax.f32 %v656_v40, 0.0 }
 0x24b   :  { %v696_v43 = vpack.c.bf16 %v692_v42, %v688_v41  ;;  %v669_v46 = vpop.f32.mrf.mxu3 }
 0x24c   :  { %v681_v44 = vpop.f32.mrf.mxu1  ;;  %v670_v48 = vadd.f32 %v669_v46, %v305_v45 }
 0x24d   :  { %938 = vmatmul.bf16.vlgmr.msra.gmra.mxu1 %v696_v43  ;;  %v682_v49 = vadd.f32 %v681_v44, %v668_v47 }
 0x24f   :  { %v689_v52 = vmax.f32 %v682_v49, 0.0 }
 0x254   :  { %v683_v50 = vpop.f32.mrf.mxu1 }
 0x255   :  { %v684_v51 = vadd.f32 %v683_v50, %v670_v48 }
 0x257   :  { %v693_v53 = vmax.f32 %v684_v51, 0.0 }
 0x259   :  { %v697_v54 = vpack.c.bf16 %v693_v53, %v689_v52 }
 0x25b   :  { %1362 = vmatmul.msk.bf16.vlgmr.msrb.gmra.mxu3 %vm43_vm0, %v697_v54 }
 0x2c0   :  { %v911_v55 = vpop.f32.mrf.mxu2 }
 0x2c1   :  { %v912_v57 = vadd.f32 %v911_v55, %v748_v56  ;;  %v925_v58 = vpop.f32.mrf.mxu0 }
 0x2c3   :  { %v926_v60 = vadd.f32 %v925_v58, %v912_v57 }
 0x2c8   :  { %v913_v61 = vpop.f32.mrf.mxu2 }
 0x2c9   :  { %v914_v0 = vadd.f32 %v913_v61, %v748_v56  ;;  %v927_v2 = vpop.f32.mrf.mxu0 }
 0x2ca   :  { %v939_v59 = vpop.f32.mrf.mxu1 }
 0x2cb   :  { %v940_v62 = vadd.f32 %v939_v59, %v926_v60  ;;  %v928_v4 = vadd.f32 %v927_v2, %v914_v0 }
 0x2d2   :  { %v941_v3 = vpop.f32.mrf.mxu1 }
 0x2d3   :  { %v942_v5 = vadd.f32 %v941_v3, %v928_v4 }
 0x2de   :  { %v953_v63 = vpop.f32.mrf.mxu3 }
 0x2df   :  { %v954_v1 = vadd.f32 %v953_v63, %v940_v62 }
 0x2e1   :  { %958 = vst [vmem:[%s2023_s7] sm:$0xff] %v954_v1 }
 0x2e6   :  { %v955_v6 = vpop.f32.mrf.mxu3 }
 0x2e7   :  { %v956_v7 = vadd.f32 %v955_v6, %v942_v5 }
 0x2e9   :  { %959 = vst [vmem:[%s2023_s7 + $0x8] sm:$0xff] %v956_v7 }

</bundles_post_ra>
